<compile_context>
chip_gen: v5e
topology: v5e:2x2
jax: 0.10.0
libtpu: 0.0.40
codegen_flags: <defaults>
</compile_context>

<pallas_src>
import jax
import jax.numpy as jnp
from jax.experimental import pallas as pl
from jax.experimental.pallas import tpu as pltpu

INPUT_DIM = 6
HIDDEN = 128
OUTPUT_DIM = 2
LANE = 128
MAX_TILE_B = 2048        # batch lanes per grid step (multiple of 128)


def qnet_kernel(x_ref, w1_ref, b1_ref, w2_ref, b2_ref, w3_ref, b3_ref, o_ref):
    # Transposed formulation: hidden on sublanes, batch on lanes.
    x = x_ref[...]                       # (6, TILE_B)        f32
    w1 = w1_ref[...]                     # (128, 6)           f32, VMEM-resident

    # Layer 1: Linear(6 -> 128) as 6 outer-product FMAs on the VPU.
    # h1[h, b] = sum_k w1[h, k] * x[k, b]
    h1 = w1[:, 0:1] * x[0:1, :]
    for k in range(1, INPUT_DIM):
        h1 = h1 + w1[:, k:k + 1] * x[k:k + 1, :]
    h1 = jnp.maximum(h1 + b1_ref[...], 0.0)          # (128, TILE_B) f32

    # Layer 2: Linear(128 -> 128) + ReLU on the MXU, bf16 inputs, f32 accumulation.
    h2 = jnp.dot(w2_ref[...], h1.astype(jnp.bfloat16),
                 preferred_element_type=jnp.float32)  # (128, TILE_B) f32
    h2 = jnp.maximum(h2 + b2_ref[...], 0.0)

    # Layer 3: Linear(128 -> 2) on the VPU + XLU (no padded MXU pass):
    # q_j[b] = sum_h h2[h, b] * w3[h, j]
    w3 = w3_ref[...]                                          # (128, 2) f32
    q0 = jnp.sum(h2 * w3[:, 0:1], axis=0, keepdims=True)      # (1, TILE_B)
    q1 = jnp.sum(h2 * w3[:, 1:2], axis=0, keepdims=True)      # (1, TILE_B)
    o_ref[...] = jnp.concatenate([q0, q1], axis=0) + b3_ref[...]   # (2, TILE_B), lane-dense


def qnetwork_forward(x, params):
    """x: [B, INPUT_DIM] float32 -> [B, OUTPUT_DIM] float32."""
    w1_t, b1_c, w2_t, b2_c, w3, b3_c = params   # pre-transposed / pre-cast at init
    B = x.shape[0]

    x_t = x.T                                   # (INPUT_DIM, B): batch on the lane axis

    # Batch tile: multiple of 128 lanes, capped for VMEM, and split so that large
    # batches produce >= 2 grid steps (lets v7x shard them across its 2 TensorCores).
    half = (B + 1) // 2
    tile_b = min(MAX_TILE_B, max(LANE, ((half + LANE - 1) // LANE) * LANE))
    grid = (pl.cdiv(B, tile_b),)                # ragged final tile is masked by Pallas

    out_t = pl.pallas_call(
        qnet_kernel,
        out_shape=jax.ShapeDtypeStruct((OUTPUT_DIM, B), jnp.float32),
        grid=grid,
        in_specs=[
            pl.BlockSpec((INPUT_DIM, tile_b), lambda i: (0, i)),     # x^T: streamed per tile
            pl.BlockSpec((HIDDEN, INPUT_DIM), lambda i: (0, 0)),     # w1^T: resident
            pl.BlockSpec((HIDDEN, 1), lambda i: (0, 0)),             # b1 column: resident
            pl.BlockSpec((HIDDEN, HIDDEN), lambda i: (0, 0)),        # w2^T (bf16): resident
            pl.BlockSpec((HIDDEN, 1), lambda i: (0, 0)),             # b2 column: resident
            pl.BlockSpec((HIDDEN, OUTPUT_DIM), lambda i: (0, 0)),    # w3: resident
            pl.BlockSpec((OUTPUT_DIM, 1), lambda i: (0, 0)),         # b3 column: resident
        ],
        out_specs=pl.BlockSpec((OUTPUT_DIM, tile_b), lambda i: (0, i)),
        compiler_params=pltpu.CompilerParams(
            dimension_semantics=("parallel",),   # batch tiles can shard over v7x's 2 TCs
            vmem_limit_bytes=32 << 20,           # fits v7x's 64 MiB/TC with headroom
        ),
    )(x_t, w1_t, b1_c, w2_t, b2_c, w3, b3_c)

    return out_t.T                               # (B, OUTPUT_DIM)


def init_params(key):
    """PyTorch nn.Linear-style init; weights stored pre-transposed / pre-cast for the kernel."""
    def linear(key, fan_in, fan_out):
        kw, kb = jax.random.split(key)
        bound = 1.0 / jnp.sqrt(jnp.float32(fan_in))
        w = jax.random.uniform(kw, (fan_in, fan_out), jnp.float32, -bound, bound)
        b = jax.random.uniform(kb, (fan_out,), jnp.float32, -bound, bound)
        return w, b

    k1, k2, k3 = jax.random.split(key, 3)
    w1, b1 = linear(k1, INPUT_DIM, HIDDEN)
    w2, b2 = linear(k2, HIDDEN, HIDDEN)
    w3, b3 = linear(k3, HIDDEN, OUTPUT_DIM)

    # One-time layout transforms (hoisted out of the forward path):
    #   transposed formulation (hidden on sublanes, batch on lanes); w2 cast to bf16 for the MXU.
    return (w1.T,                             # (HIDDEN, INPUT_DIM) f32
            b1.reshape(HIDDEN, 1),            # (HIDDEN, 1)         f32
            w2.T.astype(jnp.bfloat16),        # (HIDDEN, HIDDEN)    bf16
            b2.reshape(HIDDEN, 1),            # (HIDDEN, 1)         f32
            w3,                               # (HIDDEN, OUTPUT_DIM) f32
            b3.reshape(OUTPUT_DIM, 1))        # (OUTPUT_DIM, 1)     f32


if __name__ == "__main__":
    key = jax.random.PRNGKey(0)
    kx, kp = jax.random.split(key)

    batch = 4
    x = jax.random.normal(kx, (batch, INPUT_DIM), jnp.float32)
    params = init_params(kp)

    out = jax.block_until_ready(qnetwork_forward(x, params))

    # Reference in plain JAX, matching the kernel's bf16 layer-2 dtype path.
    w1_t, b1_c, w2_t, b2_c, w3, b3_c = params
    h1 = jnp.maximum(x @ w1_t.T + b1_c.reshape(1, -1), 0.0)
    h2 = jnp.dot(h1.astype(jnp.bfloat16), w2_t.T, preferred_element_type=jnp.float32)
    h2 = jnp.maximum(h2 + b2_c.reshape(1, -1), 0.0)
    ref = h2 @ w3 + b3_c.reshape(1, -1)

    assert out.shape == (batch, OUTPUT_DIM), out.shape
    assert jnp.allclose(out, ref, atol=1e-2, rtol=1e-2), "mismatch vs reference"
    print("KERNEL_OK")
</pallas_src>

<mosaic_0001>
module attributes {stable_mosaic.version = 11 : i64} {
  func.func @qnet_kernel(%arg0: i32, %arg1: memref<6x128xf32, #tpu.memory_space<vmem>>, %arg2: memref<128x6xf32, #tpu.memory_space<vmem>>, %arg3: memref<128x1xf32, #tpu.memory_space<vmem>>, %arg4: memref<128x128xbf16, #tpu.memory_space<vmem>>, %arg5: memref<128x1xf32, #tpu.memory_space<vmem>>, %arg6: memref<128x2xf32, #tpu.memory_space<vmem>>, %arg7: memref<2x1xf32, #tpu.memory_space<vmem>>, %arg8: memref<2x128xf32, #tpu.memory_space<vmem>>) attributes {dimension_semantics = [#tpu.dimension_semantics<parallel>], iteration_bounds = array<i64: 1>, scalar_prefetch = 0 : i64, scratch_operands = 0 : i64, tpu.core_type = #tpu.core_type<tc>, window_params = [{transform_indices = @transform_0, window_bounds = array<i64: 6, 128>}, {pipeline_mode = #tpu.pipeline_mode<synchronous>, transform_indices = @transform_1, window_bounds = array<i64: 128, 6>}, {pipeline_mode = #tpu.pipeline_mode<synchronous>, transform_indices = @transform_2, window_bounds = array<i64: 128, 1>}, {pipeline_mode = #tpu.pipeline_mode<synchronous>, transform_indices = @transform_3, window_bounds = array<i64: 128, 128>}, {pipeline_mode = #tpu.pipeline_mode<synchronous>, transform_indices = @transform_4, window_bounds = array<i64: 128, 1>}, {pipeline_mode = #tpu.pipeline_mode<synchronous>, transform_indices = @transform_5, window_bounds = array<i64: 128, 2>}, {pipeline_mode = #tpu.pipeline_mode<synchronous>, transform_indices = @transform_6, window_bounds = array<i64: 2, 1>}, {transform_indices = @transform_7, window_bounds = array<i64: 2, 128>}]} {
    %c0 = arith.constant 0 : index
    %c0_0 = arith.constant 0 : index
    %0 = vector.load %arg1[%c0, %c0_0] : memref<6x128xf32, #tpu.memory_space<vmem>>, vector<6x128xf32>
    %c0_1 = arith.constant 0 : index
    %c0_2 = arith.constant 0 : index
    %1 = vector.load %arg2[%c0_1, %c0_2] : memref<128x6xf32, #tpu.memory_space<vmem>>, vector<128x6xf32>
    %2 = vector.extract_strided_slice %1 {offsets = [0, 0], sizes = [128, 1], strides = [1, 1]} : vector<128x6xf32> to vector<128x1xf32>
    %3 = vector.extract_strided_slice %0 {offsets = [0, 0], sizes = [1, 128], strides = [1, 1]} : vector<6x128xf32> to vector<1x128xf32>
    %4 = vector.broadcast %2 : vector<128x1xf32> to vector<128x128xf32>
    %5 = vector.broadcast %3 : vector<1x128xf32> to vector<128x128xf32>
    %6 = arith.mulf %4, %5 : vector<128x128xf32>
    %7 = vector.extract_strided_slice %1 {offsets = [0, 1], sizes = [128, 1], strides = [1, 1]} : vector<128x6xf32> to vector<128x1xf32>
    %8 = vector.extract_strided_slice %0 {offsets = [1, 0], sizes = [1, 128], strides = [1, 1]} : vector<6x128xf32> to vector<1x128xf32>
    %9 = vector.broadcast %7 : vector<128x1xf32> to vector<128x128xf32>
    %10 = vector.broadcast %8 : vector<1x128xf32> to vector<128x128xf32>
    %11 = arith.mulf %9, %10 : vector<128x128xf32>
    %12 = arith.addf %6, %11 : vector<128x128xf32>
    %13 = vector.extract_strided_slice %1 {offsets = [0, 2], sizes = [128, 1], strides = [1, 1]} : vector<128x6xf32> to vector<128x1xf32>
    %14 = vector.extract_strided_slice %0 {offsets = [2, 0], sizes = [1, 128], strides = [1, 1]} : vector<6x128xf32> to vector<1x128xf32>
    %15 = vector.broadcast %13 : vector<128x1xf32> to vector<128x128xf32>
    %16 = vector.broadcast %14 : vector<1x128xf32> to vector<128x128xf32>
    %17 = arith.mulf %15, %16 : vector<128x128xf32>
    %18 = arith.addf %12, %17 : vector<128x128xf32>
    %19 = vector.extract_strided_slice %1 {offsets = [0, 3], sizes = [128, 1], strides = [1, 1]} : vector<128x6xf32> to vector<128x1xf32>
    %20 = vector.extract_strided_slice %0 {offsets = [3, 0], sizes = [1, 128], strides = [1, 1]} : vector<6x128xf32> to vector<1x128xf32>
    %21 = vector.broadcast %19 : vector<128x1xf32> to vector<128x128xf32>
    %22 = vector.broadcast %20 : vector<1x128xf32> to vector<128x128xf32>
    %23 = arith.mulf %21, %22 : vector<128x128xf32>
    %24 = arith.addf %18, %23 : vector<128x128xf32>
    %25 = vector.extract_strided_slice %1 {offsets = [0, 4], sizes = [128, 1], strides = [1, 1]} : vector<128x6xf32> to vector<128x1xf32>
    %26 = vector.extract_strided_slice %0 {offsets = [4, 0], sizes = [1, 128], strides = [1, 1]} : vector<6x128xf32> to vector<1x128xf32>
    %27 = vector.broadcast %25 : vector<128x1xf32> to vector<128x128xf32>
    %28 = vector.broadcast %26 : vector<1x128xf32> to vector<128x128xf32>
    %29 = arith.mulf %27, %28 : vector<128x128xf32>
    %30 = arith.addf %24, %29 : vector<128x128xf32>
    %31 = vector.extract_strided_slice %1 {offsets = [0, 5], sizes = [128, 1], strides = [1, 1]} : vector<128x6xf32> to vector<128x1xf32>
    %32 = vector.extract_strided_slice %0 {offsets = [5, 0], sizes = [1, 128], strides = [1, 1]} : vector<6x128xf32> to vector<1x128xf32>
    %33 = vector.broadcast %31 : vector<128x1xf32> to vector<128x128xf32>
    %34 = vector.broadcast %32 : vector<1x128xf32> to vector<128x128xf32>
    %35 = arith.mulf %33, %34 : vector<128x128xf32>
    %36 = arith.addf %30, %35 : vector<128x128xf32>
    %c0_3 = arith.constant 0 : index
    %c0_4 = arith.constant 0 : index
    %37 = vector.load %arg3[%c0_3, %c0_4] : memref<128x1xf32, #tpu.memory_space<vmem>>, vector<128x1xf32>
    %38 = vector.broadcast %37 : vector<128x1xf32> to vector<128x128xf32>
    %39 = arith.addf %36, %38 : vector<128x128xf32>
    %cst = arith.constant 0.000000e+00 : f32
    %40 = vector.broadcast %cst : f32 to vector<128x128xf32>
    %41 = arith.maximumf %39, %40 : vector<128x128xf32>
    %c0_5 = arith.constant 0 : index
    %c0_6 = arith.constant 0 : index
    %42 = vector.load %arg4[%c0_5, %c0_6] : memref<128x128xbf16, #tpu.memory_space<vmem>>, vector<128x128xbf16>
    %43 = arith.truncf %41 : vector<128x128xf32> to vector<128x128xbf16>
    %cst_7 = arith.constant dense<0.000000e+00> : vector<128x128xf32>
    %44 = tpu.matmul %42, %43, %cst_7 {dimension_numbers = #tpu.dot_dimension_numbers<[1], [0], [0], [1], [0, 0, 1, 1], [], []>} : vector<128x128xbf16>, vector<128x128xbf16>, vector<128x128xf32> -> vector<128x128xf32>
    %c0_8 = arith.constant 0 : index
    %c0_9 = arith.constant 0 : index
    %45 = vector.load %arg5[%c0_8, %c0_9] : memref<128x1xf32, #tpu.memory_space<vmem>>, vector<128x1xf32>
    %46 = vector.broadcast %45 : vector<128x1xf32> to vector<128x128xf32>
    %47 = arith.addf %44, %46 : vector<128x128xf32>
    %cst_10 = arith.constant 0.000000e+00 : f32
    %48 = vector.broadcast %cst_10 : f32 to vector<128x128xf32>
    %49 = arith.maximumf %47, %48 : vector<128x128xf32>
    %c0_11 = arith.constant 0 : index
    %c0_12 = arith.constant 0 : index
    %50 = vector.load %arg6[%c0_11, %c0_12] : memref<128x2xf32, #tpu.memory_space<vmem>>, vector<128x2xf32>
    %51 = vector.extract_strided_slice %50 {offsets = [0, 0], sizes = [128, 1], strides = [1, 1]} : vector<128x2xf32> to vector<128x1xf32>
    %52 = vector.broadcast %51 : vector<128x1xf32> to vector<128x128xf32>
    %53 = arith.mulf %49, %52 : vector<128x128xf32>
    %cst_13 = arith.constant dense<0.000000e+00> : vector<128xf32>
    %54 = vector.multi_reduction <add>, %53, %cst_13 [0] : vector<128x128xf32> to vector<128xf32>
    %55 = vector.shape_cast %54 : vector<128xf32> to vector<1x128xf32>
    %56 = vector.extract_strided_slice %50 {offsets = [0, 1], sizes = [128, 1], strides = [1, 1]} : vector<128x2xf32> to vector<128x1xf32>
    %57 = vector.broadcast %56 : vector<128x1xf32> to vector<128x128xf32>
    %58 = arith.mulf %49, %57 : vector<128x128xf32>
    %cst_14 = arith.constant dense<0.000000e+00> : vector<128xf32>
    %59 = vector.multi_reduction <add>, %58, %cst_14 [0] : vector<128x128xf32> to vector<128xf32>
    %60 = vector.shape_cast %59 : vector<128xf32> to vector<1x128xf32>
    %61 = tpu.concatenate %55, %60 in 0 : vector<1x128xf32>, vector<1x128xf32> -> vector<2x128xf32>
    %c0_15 = arith.constant 0 : index
    %c0_16 = arith.constant 0 : index
    %62 = vector.load %arg7[%c0_15, %c0_16] : memref<2x1xf32, #tpu.memory_space<vmem>>, vector<2x1xf32>
    %63 = vector.broadcast %62 : vector<2x1xf32> to vector<2x128xf32>
    %64 = arith.addf %61, %63 : vector<2x128xf32>
    %c0_17 = arith.constant 0 : index
    %c0_18 = arith.constant 0 : index
    %65 = vector.load %arg8[%c0_17, %c0_18] : memref<2x128xf32, #tpu.memory_space<vmem>>, vector<2x128xf32>
    tpu.vector_store %arg8[%c0_17, %c0_18], %64 {strides = array<i32>} : memref<2x128xf32, #tpu.memory_space<vmem>>, vector<2x128xf32>,
    return
  }
  func.func @transform_0(%arg0: i32) -> (i32, i32) {
    %c0_i32 = arith.constant 0 : i32
    %c0_i32_0 = arith.constant 0 : i32
    return %c0_i32, %arg0 : i32, i32
  }
  func.func @transform_1(%arg0: i32) -> (i32, i32) {
    %c0_i32 = arith.constant 0 : i32
    %c0_i32_0 = arith.constant 0 : i32
    %c0_i32_1 = arith.constant 0 : i32
    return %c0_i32, %c0_i32_0 : i32, i32
  }
  func.func @transform_2(%arg0: i32) -> (i32, i32) {
    %c0_i32 = arith.constant 0 : i32
    %c0_i32_0 = arith.constant 0 : i32
    %c0_i32_1 = arith.constant 0 : i32
    return %c0_i32, %c0_i32_0 : i32, i32
  }
  func.func @transform_3(%arg0: i32) -> (i32, i32) {
    %c0_i32 = arith.constant 0 : i32
    %c0_i32_0 = arith.constant 0 : i32
    %c0_i32_1 = arith.constant 0 : i32
    return %c0_i32, %c0_i32_0 : i32, i32
  }
  func.func @transform_4(%arg0: i32) -> (i32, i32) {
    %c0_i32 = arith.constant 0 : i32
    %c0_i32_0 = arith.constant 0 : i32
    %c0_i32_1 = arith.constant 0 : i32
    return %c0_i32, %c0_i32_0 : i32, i32
  }
  func.func @transform_5(%arg0: i32) -> (i32, i32) {
    %c0_i32 = arith.constant 0 : i32
    %c0_i32_0 = arith.constant 0 : i32
    %c0_i32_1 = arith.constant 0 : i32
    return %c0_i32, %c0_i32_0 : i32, i32
  }
  func.func @transform_6(%arg0: i32) -> (i32, i32) {
    %c0_i32 = arith.constant 0 : i32
    %c0_i32_0 = arith.constant 0 : i32
    %c0_i32_1 = arith.constant 0 : i32
    return %c0_i32, %c0_i32_0 : i32, i32
  }
  func.func @transform_7(%arg0: i32) -> (i32, i32) {
    %c0_i32 = arith.constant 0 : i32
    %c0_i32_0 = arith.constant 0 : i32
    return %c0_i32, %arg0 : i32, i32
  }
}

</mosaic_0001>

<bundles_post_ra>
// kernel: tpu_custom_call.1
= control target key start
LH: loop header
LB: loop body
LE: loop exit
PB: predicated region body
PF: predicated region fallthrough
CT: control target
= control target key end

     0   :  { %v1369_v2 = vmov 1   ;;  %v1370_v3 = vmov 0   ;;  %s2266_s0 = inlined_call_operand.vmem [shape: f32[6,4], index: 0, kind: input, shape index: {}]   ;;  %s2267_s1 = inlined_call_operand.vmem [shape: f32[128,6], index: 1, kind: input, shape index: {}]   ;;  %s2268_s2 = inlined_call_operand.vmem [shape: f32[128,1], index: 2, kind: input, shape index: {}]   ;;  %s2269_s3 = inlined_call_operand.vmem [shape: bf16[128,128], index: 3, kind: input, shape index: {}]   ;;  %s2270_s4 = inlined_call_operand.vmem [shape: f32[128,1], index: 4, kind: input, shape index: {}]   ;;  %s2271_s5 = inlined_call_operand.vmem [shape: f32[128,2], index: 5, kind: input, shape index: {}]   ;;  %s2272_s6 = inlined_call_operand.vmem [shape: f32[2,1], index: 6, kind: input, shape index: {}]   ;;  %s2273_s7 = inlined_call_operand.hbm [shape: f32[2,4], index: 7, kind: output, shape index: {}]  }
   0x1   :  { %v1419_v0 = vld [vmem:[%s2267_s1 + $0x20] sm:$0xff]  ;;  %v1424_v1 = vld [vmem:[%s2267_s1 + $0x10] sm:$0xff]  ;;  %1322 = vset.pattern.permute.xlu0 %v1369_v2  ;;  %1319 = vset.pattern.permute.xlu2 %v1370_v3 }
   0x2   :  { %1318 = vset.pattern.permute.xlu1 %v1370_v3  ;;  %66 = vperm.xlu2 %1319, %v1419_v0  }
   0x3   :  { %150 = vperm.xlu0 %1322, %v1424_v1   ;;  %56 = vperm.xlu1 %1318, %v1424_v1  }
   0x4   :  { %12 = vsyncpa [#allocation3], 0  ;;  %v1435_v4 = vld [vmem:[%s2267_s1 + $0x28] sm:$0xff]  ;;  %v1440_v5 = vld [vmem:[%s2267_s1 + $0x38] sm:$0xff]  ;;  %v1371_v13 = vmov 2   ;;  %v1372_v18 = vmov 3  }
   0x5   :  { %v1445_v6 = vld [vmem:[%s2267_s1 + $0x18] sm:$0xff]  ;;  %v1453_v7 = vld [vmem:[%s2267_s1 + $0x40] sm:$0xff]  ;;  %v1458_v8 = vld [vmem:[%s2267_s1 + $0x50] sm:$0xff]  ;;  %v1373_v26 = vmov 4   ;;  %v1374_v38 = vmov 5   ;;  %vm1221_vm0 = vcmask 1040384  }
   0x6   :  { %v1466_v9 = vld [vmem:[%s2267_s1 + $0x58] sm:$0xff]  ;;  %v1471_v10 = vld [vmem:[%s2267_s1 + $0x68] sm:$0xff]  ;;  %v1479_v11 = vld [vmem:[%s2267_s1 + $0x70] sm:$0xff]  ;;  %s1238_s20 = sshll.u32 %s2273_s7, 4  ;;  %s1239_s20 = int_to_ptr.hbm [resolvable:$true] %s1238_s20 }
   0x7   :  { %v1484_v12 = vld [vmem:[%s2267_s1] sm:$0xff]  ;;  %v1492_v14 = vld [vmem:[%s2267_s1 + $0x8] sm:$0xff]  ;;  %v1505_v15 = vld [vmem:[%s2267_s1 + $0x30] sm:$0xff] }
   0x8   :  { %v1513_v16 = vld [vmem:[%s2267_s1 + $0x48] sm:$0xff]  ;;  %v1521_v17 = vld [vmem:[%s2267_s1 + $0x60] sm:$0xff]  ;;  %v1529_v19 = vld [vmem:[%s2267_s1 + $0x78] sm:$0xff] }
   0x9   :  { %v1609_v46 = vld [vmem:[%s2266_s0] sm:$0x3f] }
   0xa   :  { %71 = vperm.xlu2 %1319, %v1435_v4   ;;  %v1612_v47 = vperm.slane %v1609_v46, 0  ;;  %v1615_v48 = vperm.slane %v1609_v46, 2  ;;  %v1618_v49 = vperm.slane %v1609_v46, 1 }
   0xb   :  { %170 = vperm.xlu0 %1322, %v1440_v5   ;;  %61 = vperm.xlu1 %1318, %v1445_v6  }
  0x12   :  { %86 = vperm.xlu2 %1319, %v1453_v7  }
  0x13   :  { %182 = vperm.xlu0 %1322, %v1458_v8   ;;  %81 = vperm.xlu1 %1318, %v1440_v5  }
  0x1a   :  { %101 = vperm.xlu2 %1319, %v1466_v9  }
  0x1b   :  { %194 = vperm.xlu0 %1322, %v1471_v10   ;;  %96 = vperm.xlu1 %1318, %v1458_v8  }
  0x22   :  { %116 = vperm.xlu2 %1319, %v1479_v11  }
  0x23   :  { %1323 = vset.pattern.permute.xlu0 %v1371_v13  ;;  %111 = vperm.xlu1 %1318, %v1471_v10  }
  0x24   :  { %239 = vperm.xlu0 %1323, %v1484_v12  }
  0x2a   :  { %1321 = vset.pattern.permute.xlu2 %v1369_v2 }
  0x2b   :  { %1320 = vset.pattern.permute.xlu1 %v1369_v2  ;;  %146 = vperm.xlu2 %1321, %v1492_v14  }
  0x2c   :  { %259 = vperm.xlu0 %1323, %v1435_v4   ;;  %142 = vperm.xlu1 %1320, %v1484_v12  }
  0x33   :  { %158 = vperm.xlu2 %1321, %v1419_v0  }
  0x34   :  { %271 = vperm.xlu0 %1323, %v1453_v7   ;;  %154 = vperm.xlu1 %1320, %v1445_v6  }
  0x3b   :  { %166 = vperm.xlu2 %1321, %v1505_v15  }
  0x3c   :  { %283 = vperm.xlu0 %1323, %v1466_v9   ;;  %162 = vperm.xlu1 %1320, %v1435_v4  }
  0x43   :  { %178 = vperm.xlu2 %1321, %v1513_v16  }
  0x44   :  { %295 = vperm.xlu0 %1323, %v1479_v11   ;;  %174 = vperm.xlu1 %1320, %v1453_v7  }
  0x4b   :  { %190 = vperm.xlu2 %1321, %v1521_v17  }
  0x4c   :  { %1327 = vset.pattern.permute.xlu0 %v1372_v18  ;;  %186 = vperm.xlu1 %1320, %v1466_v9  }
  0x4d   :  { %340 = vperm.xlu0 %1327, %v1492_v14  }
  0x53   :  { %202 = vperm.xlu2 %1321, %v1529_v19  }
  0x54   :  { %198 = vperm.xlu1 %1320, %v1479_v11  }
  0x55   :  { %360 = vperm.xlu0 %1327, %v1505_v15  }
  0x5b   :  { %1325 = vset.pattern.permute.xlu2 %v1371_v13 }
  0x5c   :  { %1324 = vset.pattern.permute.xlu1 %v1371_v13  ;;  %v1534_v20 = vpop.permute.xlu2 %66  ;;  %247 = vperm.xlu2 %1325, %v1424_v1  }
  0x5d   :  { %372 = vperm.xlu0 %1327, %v1513_v16   ;;  %243 = vperm.xlu1 %1324, %v1492_v14  }
  0x64   :  { %v1539_v21 = vpop.permute.xlu2 %71  ;;  %255 = vperm.xlu2 %1325, %v1419_v0  }
  0x65   :  { %384 = vperm.xlu0 %1327, %v1521_v17   ;;  %251 = vperm.xlu1 %1324, %v1445_v6   ;;  %v130_v53 = vmul.f32 %v1612_v47, %v1539_v21 }
  0x6c   :  { %v1544_v22 = vpop.permute.xlu2 %86  ;;  %267 = vperm.xlu2 %1325, %v1440_v5  }
  0x6d   :  { %396 = vperm.xlu0 %1327, %v1529_v19   ;;  %263 = vperm.xlu1 %1324, %v1505_v15   ;;  %v133_v60 = vmul.f32 %v1612_v47, %v1544_v22 }
  0x74   :  { %v1549_v23 = vpop.permute.xlu2 %101  ;;  %279 = vperm.xlu2 %1325, %v1458_v8  }
  0x75   :  { %v151_v24 = vpop.permute.xlu0 %150  ;;  %v57_v25 = vpop.permute.xlu1 %56  ;;  %1331 = vset.pattern.permute.xlu0 %v1373_v26  ;;  %275 = vperm.xlu1 %1324, %v1513_v16  }
  0x76   :  { %441 = vperm.xlu0 %1331, %v1424_v1   ;;  %v208_v57 = vmul.f32 %v1618_v49, %v151_v24  ;;  %v127_v58 = vmul.f32 %v1612_v47, %v57_v25 }
  0x78   :  { %v224_v61 = vadd.f32 %v208_v57, %v127_v58 }
  0x7c   :  { %v1555_v27 = vpop.permute.xlu2 %116  ;;  %291 = vperm.xlu2 %1325, %v1471_v10  }
  0x7d   :  { %v1558_v28 = vpop.permute.xlu1 %61  ;;  %287 = vperm.xlu1 %1324, %v1521_v17   ;;  %v1561_v29 = vpop.permute.xlu0 %170 }
  0x7e   :  { %461 = vperm.xlu0 %1331, %v1440_v5   ;;  %v213_v57 = vmul.f32 %v1618_v49, %v1561_v29 }
  0x84   :  { %1326 = vset.pattern.permute.xlu2 %v1372_v18 }
  0x85   :  { %v1564_v30 = vpop.permute.xlu1 %81  ;;  %299 = vperm.xlu1 %1324, %v1529_v19   ;;  %v1567_v31 = vpop.permute.xlu2 %146  ;;  %336 = vperm.xlu2 %1326, %v1484_v12  }
  0x86   :  { %473 = vperm.xlu0 %1331, %v1458_v8   ;;  %v1571_v32 = vpop.permute.xlu0 %182  ;;  %v132_v58 = vmul.f32 %v1612_v47, %v1564_v30 }
  0x8d   :  { %v1573_v33 = vpop.permute.xlu1 %96  ;;  %1328 = vset.pattern.permute.xlu1 %v1372_v18  ;;  %v1575_v34 = vpop.permute.xlu2 %158  ;;  %348 = vperm.xlu2 %1326, %v1445_v6  }
  0x8e   :  { %485 = vperm.xlu0 %1331, %v1471_v10   ;;  %344 = vperm.xlu1 %1328, %v1424_v1   ;;  %v1580_v35 = vpop.permute.xlu0 %194 }
  0x95   :  { %v1582_v36 = vpop.permute.xlu1 %111  ;;  %v1584_v37 = vpop.permute.xlu2 %166  ;;  %356 = vperm.xlu2 %1326, %v1435_v4  }
  0x96   :  { %1332 = vset.pattern.permute.xlu0 %v1374_v38  ;;  %352 = vperm.xlu1 %1328, %v1419_v0   ;;  %v1589_v39 = vpop.permute.xlu0 %239 }
  0x97   :  { %530 = vperm.xlu0 %1332, %v1484_v12  }
  0x9d   :  { %v1592_v40 = vpop.permute.xlu2 %178  ;;  %368 = vperm.xlu2 %1326, %v1453_v7  }
  0x9e   :  { %364 = vperm.xlu1 %1328, %v1440_v5   ;;  %v1596_v41 = vpop.permute.xlu1 %142  ;;  %v260_v42 = vpop.permute.xlu0 %259 }
  0x9f   :  { %550 = vperm.xlu0 %1332, %v1435_v4   ;;  %v308_v54 = vmul.f32 %v1615_v48, %v260_v42 }
  0xa5   :  { %v1599_v43 = vpop.permute.xlu2 %190  ;;  %380 = vperm.xlu2 %1326, %v1466_v9  }
  0xa6   :  { %376 = vperm.xlu1 %1328, %v1458_v8   ;;  %v1603_v44 = vpop.permute.xlu1 %154  ;;  %v272_v45 = vpop.permute.xlu0 %271 }
  0xa7   :  { %562 = vperm.xlu0 %1332, %v1453_v7   ;;  %v311_v13 = vmul.f32 %v1615_v48, %v272_v45  ;;  %v136_v45 = vmul.f32 %v1612_v47, %v1549_v23 }
  0xad   :  { %v1620_v50 = vpop.permute.xlu2 %202  ;;  %392 = vperm.xlu2 %1326, %v1479_v11  }
  0xae   :  { %388 = vperm.xlu1 %1328, %v1471_v10   ;;  %v163_v51 = vpop.permute.xlu1 %162  ;;  %v284_v52 = vpop.permute.xlu0 %283 }
  0xaf   :  { %v211_v55 = vmul.f32 %v1618_v49, %v163_v51  ;;  %574 = vperm.xlu0 %1332, %v1466_v9  }
  0xb1   :  { %v227_v56 = vadd.f32 %v211_v55, %v130_v53  ;;  %v314_v55 = vmul.f32 %v1615_v48, %v284_v52 }
  0xb3   :  { %v1631_v59 = vadd.f32 %v308_v54, %v227_v56 }
  0xb5   :  { %1330 = vset.pattern.permute.xlu2 %v1373_v26 }
  0xb6   :  { %1329 = vset.pattern.permute.xlu1 %v1373_v26  ;;  %v175_v62 = vpop.permute.xlu1 %174  ;;  %v248_v63 = vpop.permute.xlu2 %247  ;;  %437 = vperm.xlu2 %1330, %v1492_v14  }
  0xb7   :  { %v214_v18 = vmul.f32 %v1618_v49, %v175_v62  ;;  %v305_v21 = vmul.f32 %v1615_v48, %v248_v63  ;;  %586 = vperm.xlu0 %1332, %v1479_v11   ;;  %433 = vperm.xlu1 %1329, %v1484_v12   ;;  %v296_v24 = vpop.permute.xlu0 %295  ;;  %v139_v62 = vmul.f32 %v1612_v47, %v1555_v27 }
  0xb8   :  { %v229_v63 = vadd.f32 %v213_v57, %v132_v58  ;;  %v317_v30 = vmul.f32 %v1615_v48, %v296_v24  ;;  %v135_v27 = vmul.f32 %v1612_v47, %v1573_v33  ;;  %v219_v33 = vmul.f32 %v1618_v49, %v1580_v35 }
  0xb9   :  { %v230_v25 = vadd.f32 %v214_v18, %v133_v60  ;;  %v1643_v22 = vadd.f32 %v305_v21, %v224_v61  ;;  %v216_v21 = vmul.f32 %v1618_v49, %v1571_v32 }
  0xbb   :  { %v1645_v42 = vadd.f32 %v311_v13, %v230_v25 }
  0xbe   :  { %v187_v26 = vpop.permute.xlu1 %186  ;;  %v1647_v51 = vpop.permute.xlu2 %255  ;;  %449 = vperm.xlu2 %1330, %v1419_v0  }
  0xbf   :  { %v217_v53 = vmul.f32 %v1618_v49, %v187_v26  ;;  %1335 = vset.pattern.permute.xlu0 %v1370_v3  ;;  %445 = vperm.xlu1 %1329, %v1445_v6   ;;  %v1655_v54 = vpop.permute.xlu0 %340 }
  0xc0   :  { %46 = vperm.xlu0 %1335, %v1484_v12  }
  0xc1   :  { %v233_v56 = vadd.f32 %v217_v53, %v136_v45 }
  0xc3   :  { %v1663_v23 = vadd.f32 %v314_v55, %v233_v56  ;;  %v138_v55 = vmul.f32 %v1612_v47, %v1582_v36 }
  0xc5   :  { %v235_v57 = vadd.f32 %v219_v33, %v138_v55  ;;  %v632_v33 = vld [vmem:[%s2268_s2 + $0x30] sm:$0xff] }
  0xc6   :  { %v199_v60 = vpop.permute.xlu1 %198  ;;  %v268_v61 = vpop.permute.xlu2 %267  ;;  %457 = vperm.xlu2 %1330, %v1505_v15  }
  0xc7   :  { %v220_v12 = vmul.f32 %v1618_v49, %v199_v60  ;;  %v310_v52 = vmul.f32 %v1615_v48, %v268_v61  ;;  %453 = vperm.xlu1 %1329, %v1435_v4   ;;  %v1671_v29 = vpop.permute.xlu0 %360  ;;  %v232_v4 = vadd.f32 %v216_v21, %v135_v27 }
  0xc8   :  { %51 = vperm.xlu0 %1335, %v1492_v14  }
  0xc9   :  { %v236_v13 = vadd.f32 %v220_v12, %v139_v62  ;;  %v1675_v18 = vadd.f32 %v310_v52, %v229_v63  ;;  %v128_v63 = vmul.f32 %v1612_v47, %v1558_v28 }
  0xcb   :  { %v1681_v25 = vadd.f32 %v317_v30, %v236_v13  ;;  %v1720_v30 = vperm.slane %v1609_v46, 3 }
  0xce   :  { %v280_v26 = vpop.permute.xlu2 %279  ;;  %469 = vperm.xlu2 %1330, %v1513_v16  }
  0xcf   :  { %v313_v45 = vmul.f32 %v1615_v48, %v280_v26  ;;  %465 = vperm.xlu1 %1329, %v1453_v7   ;;  %v1686_v24 = vpop.permute.xlu1 %243  ;;  %v1688_v53 = vpop.permute.xlu0 %372  ;;  %v627_v26 = vld [vmem:[%s2268_s2 + $0x8] sm:$0xff] }
  0xd0   :  { %76 = vperm.xlu0 %1335, %v1505_v15  }
  0xd1   :  { %v1691_v32 = vadd.f32 %v313_v45, %v232_v4 }
  0xd6   :  { %v292_v56 = vpop.permute.xlu2 %291  ;;  %481 = vperm.xlu2 %1330, %v1521_v17  }
  0xd7   :  { %v316_v7 = vmul.f32 %v1615_v48, %v292_v56  ;;  %477 = vperm.xlu1 %1329, %v1466_v9   ;;  %v252_v58 = vpop.permute.xlu1 %251  ;;  %v1700_v60 = vpop.permute.xlu0 %384  ;;  %v209_v9 = vmul.f32 %v1618_v49, %v1603_v44 }
  0xd8   :  { %91 = vperm.xlu0 %1335, %v1513_v16   ;;  %v306_v12 = vmul.f32 %v1615_v48, %v252_v58 }
  0xd9   :  { %v1703_v61 = vadd.f32 %v316_v7, %v235_v57  ;;  %v225_v52 = vadd.f32 %v209_v9, %v128_v63  ;;  %v635_v7 = vld [vmem:[%s2268_s2 + $0x48] sm:$0xff] }
  0xdb   :  { %v322_v21 = vadd.f32 %v306_v12, %v225_v52  ;;  %v210_v52 = vmul.f32 %v1618_v49, %v1575_v34 }
  0xde   :  { %493 = vperm.xlu2 %1330, %v1529_v19  }
  0xdf   :  { %489 = vperm.xlu1 %1329, %v1479_v11   ;;  %v1707_v35 = vpop.permute.xlu1 %263  ;;  %v1709_v36 = vpop.permute.xlu2 %336 }
  0xe0   :  { %106 = vperm.xlu0 %1335, %v1521_v17   ;;  %v1712_v62 = vpop.permute.xlu0 %396 }
  0xe6   :  { %1334 = vset.pattern.permute.xlu2 %v1374_v38 }
  0xe7   :  { %1333 = vset.pattern.permute.xlu1 %v1374_v38  ;;  %v1724_v11 = vpop.permute.xlu1 %275  ;;  %538 = vperm.xlu2 %1334, %v1424_v1   ;;  %v349_v13 = vpop.permute.xlu2 %348 }
  0xe8   :  { %v403_v44 = vmul.f32 %v1720_v30, %v349_v13  ;;  %121 = vperm.xlu0 %1335, %v1529_v19   ;;  %534 = vperm.xlu1 %1333, %v1492_v14   ;;  %v442_v28 = vpop.permute.xlu0 %441  ;;  %v129_v13 = vmul.f32 %v1612_v47, %v1534_v20 }
  0xea   :  { %v1730_v27 = vadd.f32 %v403_v44, %v322_v21  ;;  %v638_v21 = vld [vmem:[%s2268_s2 + $0x60] sm:$0xff] }
  0xef   :  { %v1735_v38 = vpop.permute.xlu1 %287  ;;  %546 = vperm.xlu2 %1334, %v1419_v0   ;;  %v357_v1 = vpop.permute.xlu2 %356 }
  0xf0   :  { %v405_v4 = vmul.f32 %v1720_v30, %v357_v1  ;;  %649 = vperm.xlu0 %1335, %v627_v26   ;;  %542 = vperm.xlu1 %1333, %v1445_v6   ;;  %v462_v45 = vpop.permute.xlu0 %461 }
  0xf2   :  { %v1741_v14 = vadd.f32 %v405_v4, %v1631_v59  ;;  %v1755_v59 = vperm.slane %v1609_v46, 4 }
  0xf7   :  { %v1746_v55 = vpop.permute.xlu1 %299  ;;  %558 = vperm.xlu2 %1334, %v1440_v5   ;;  %v369_v56 = vpop.permute.xlu2 %368 }
  0xf8   :  { %v408_v0 = vmul.f32 %v1720_v30, %v369_v56  ;;  %674 = vperm.xlu0 %1335, %v632_v33   ;;  %554 = vperm.xlu1 %1333, %v1505_v15   ;;  %v474_v57 = vpop.permute.xlu0 %473  ;;  %v626_v33 = vld [vmem:[%s2268_s2] sm:$0xff] }
  0xfa   :  { %v1752_v6 = vadd.f32 %v408_v0, %v1645_v42  ;;  %v499_v42 = vmul.f32 %v1755_v59, %v442_v28  ;;  %v226_v28 = vadd.f32 %v210_v52, %v129_v13  ;;  %v507_v13 = vmul.f32 %v1755_v59, %v474_v57 }
  0xff   :  { %570 = vperm.xlu2 %1334, %v1458_v8   ;;  %v381_v5 = vpop.permute.xlu2 %380 }
 0x100   :  { %v411_v58 = vmul.f32 %v1720_v30, %v381_v5  ;;  %689 = vperm.xlu0 %1335, %v635_v7   ;;  %566 = vperm.xlu1 %1333, %v1513_v16   ;;  %v345_v15 = vpop.permute.xlu1 %344  ;;  %v486_v9 = vpop.permute.xlu0 %485  ;;  %v307_v16 = vmul.f32 %v1615_v48, %v1647_v51  ;;  %v504_v7 = vmul.f32 %v1755_v59, %v462_v45 }
 0x101   :  { %v402_v63 = vmul.f32 %v1720_v30, %v345_v15 }
 0x102   :  { %v1766_v12 = vadd.f32 %v411_v58, %v1663_v23  ;;  %v323_v20 = vadd.f32 %v307_v16, %v226_v28  ;;  %v780_v58 = vld [vmem:[%s2270_s4 + $0x10] sm:$0xff]  ;;  %v783_v28 = vld [vmem:[%s2270_s4 + $0x28] sm:$0xff] }
 0x103   :  { %v418_v8 = vadd.f32 %v402_v63, %v1643_v22 }
 0x105   :  { %v1778_v44 = vadd.f32 %v499_v42, %v418_v8  ;;  %v628_v42 = vld [vmem:[%s2268_s2 + $0x10] sm:$0xff] }
 0x107   :  { %582 = vperm.xlu2 %1334, %v1471_v10   ;;  %v393_v23 = vpop.permute.xlu2 %392  ;;  %v641_v10 = vld [vmem:[%s2268_s2 + $0x78] sm:$0xff] }
 0x108   :  { %v414_v34 = vmul.f32 %v1720_v30, %v393_v23  ;;  %704 = vperm.xlu0 %1335, %v638_v21   ;;  %578 = vperm.xlu1 %1333, %v1521_v17   ;;  %v353_v22 = vpop.permute.xlu1 %352 }
 0x109   :  { %v404_v26 = vmul.f32 %v1720_v30, %v353_v22  ;;  %v1784_v51 = vpop.permute.xlu0 %530  ;;  %v630_v22 = vld [vmem:[%s2268_s2 + $0x20] sm:$0xff] }
 0x10a   :  { %v1787_v1 = vadd.f32 %v414_v34, %v1681_v25  ;;  %v631_v34 = vld [vmem:[%s2268_s2 + $0x28] sm:$0xff] }
 0x10b   :  { %v420_v4 = vadd.f32 %v404_v26, %v323_v20 }
 0x10f   :  { %1336 = vset.pattern.permute.xlu2 %v1370_v3 }
 0x110   :  { %719 = vperm.xlu0 %1335, %v641_v10   ;;  %590 = vperm.xlu1 %1333, %v1529_v19   ;;  %v365_v17 = vpop.permute.xlu1 %364  ;;  %v1797_v56 = vpop.permute.xlu2 %437  ;;  %v629_v19 = vld [vmem:[%s2268_s2 + $0x18] sm:$0xff] }
 0x111   :  { %v407_v25 = vmul.f32 %v1720_v30, %v365_v17  ;;  %644 = vperm.xlu2 %1336, %v626_v33   ;;  %v1800_v0 = vpop.permute.xlu0 %550  ;;  %v786_v33 = vld [vmem:[%s2270_s4 + $0x40] sm:$0xff] }
 0x113   :  { %v423_v5 = vadd.f32 %v407_v25, %v1675_v18  ;;  %v634_v25 = vld [vmem:[%s2268_s2 + $0x40] sm:$0xff] }
 0x115   :  { %v1807_v15 = vadd.f32 %v504_v7, %v423_v5  ;;  %v633_v7 = vld [vmem:[%s2268_s2 + $0x38] sm:$0xff] }
 0x118   :  { %806 = vperm.xlu0 %1335, %v780_v58   ;;  %1337 = vset.pattern.permute.xlu1 %v1370_v3  ;;  %v377_v45 = vpop.permute.xlu1 %376  ;;  %v450_v63 = vpop.permute.xlu2 %449  ;;  %v789_v58 = vld [vmem:[%s2270_s4 + $0x58] sm:$0xff] }
 0x119   :  { %v410_v18 = vmul.f32 %v1720_v30, %v377_v45  ;;  %659 = vperm.xlu2 %1336, %v629_v19   ;;  %v501_v52 = vmul.f32 %v1755_v59, %v450_v63  ;;  %654 = vperm.xlu1 %1337, %v628_v42   ;;  %v1818_v8 = vpop.permute.xlu0 %562  ;;  %v637_v19 = vld [vmem:[%s2268_s2 + $0x58] sm:$0xff]  ;;  %v636_v42 = vld [vmem:[%s2268_s2 + $0x50] sm:$0xff] }
 0x11b   :  { %v426_v16 = vadd.f32 %v410_v18, %v1691_v32  ;;  %v1822_v21 = vadd.f32 %v501_v52, %v420_v4  ;;  %v510_v4 = vmul.f32 %v1755_v59, %v486_v9 }
 0x11d   :  { %v1827_v23 = vadd.f32 %v507_v13, %v426_v16  ;;  %v206_v13 = vmul.f32 %v1618_v49, %v1596_v41  ;;  %v639_v41 = vld [vmem:[%s2268_s2 + $0x68] sm:$0xff] }
 0x120   :  { %821 = vperm.xlu0 %1335, %v783_v28   ;;  %v389_v57 = vpop.permute.xlu1 %388  ;;  %v1835_v20 = vpop.permute.xlu2 %457 }
 0x121   :  { %v413_v32 = vmul.f32 %v1720_v30, %v389_v57  ;;  %669 = vperm.xlu2 %1336, %v631_v34   ;;  %664 = vperm.xlu1 %1337, %v630_v22   ;;  %v1838_v26 = vpop.permute.xlu0 %574  ;;  %v303_v34 = vmul.f32 %v1615_v48, %v1589_v39  ;;  %v792_v57 = vld [vmem:[%s2270_s4 + $0x70] sm:$0xff] }
 0x123   :  { %v429_v10 = vadd.f32 %v413_v32, %v1703_v61  ;;  %v640_v32 = vld [vmem:[%s2268_s2 + $0x70] sm:$0xff] }
 0x125   :  { %v1845_v17 = vadd.f32 %v510_v4, %v429_v10  ;;  %v1889_v4 = vperm.slane %v1609_v46, 5 }
 0x127   :  { %v594_v46 = vmul.f32 %v1889_v4, %v1784_v51  ;;  %v779_v51 = vld [vmem:[%s2270_s4 + $0x8] sm:$0xff] }
 0x128   :  { %836 = vperm.xlu0 %1335, %v786_v33   ;;  %v1853_v5 = vpop.permute.xlu2 %469 }
 0x129   :  { %684 = vperm.xlu2 %1336, %v634_v25   ;;  %679 = vperm.xlu1 %1337, %v633_v7   ;;  %v434_v61 = vpop.permute.xlu1 %433  ;;  %v1855_v9 = vpop.permute.xlu0 %586 }
 0x12a   :  { %v497_v33 = vmul.f32 %v1755_v59, %v434_v61 }
 0x130   :  { %851 = vperm.xlu0 %1335, %v789_v58   ;;  %v1866_v45 = vpop.permute.xlu2 %481 }
 0x131   :  { %699 = vperm.xlu2 %1336, %v637_v19   ;;  %694 = vperm.xlu1 %1337, %v636_v42   ;;  %v446_v63 = vpop.permute.xlu1 %445  ;;  %v207_v42 = vmul.f32 %v1618_v49, %v1567_v31 }
 0x132   :  { %v500_v18 = vmul.f32 %v1755_v59, %v446_v63  ;;  %v47_v52 = vpop.permute.xlu0 %46 }
 0x133   :  { %v125_v16 = vmul.f32 %v1612_v47, %v47_v52  ;;  %v304_v52 = vmul.f32 %v1615_v48, %v1686_v24  ;;  %v401_v24 = vmul.f32 %v1720_v30, %v1655_v54 }
 0x134   :  { %v1873_v28 = vadd.f32 %v500_v18, %v1730_v27  ;;  %v400_v27 = vmul.f32 %v1720_v30, %v1709_v36  ;;  %v599_v18 = vmul.f32 %v1889_v4, %v1800_v0  ;;  %v778_v0 = vld [vmem:[%s2270_s4] sm:$0xff] }
 0x135   :  { %v222_v22 = vadd.f32 %v206_v13, %v125_v16  ;;  %v1908_v16 = vld [vmem:[%s2271_s5 + $0x8] sm:$0xff] }
 0x137   :  { %v319_v39 = vadd.f32 %v303_v34, %v222_v22  ;;  %v498_v22 = vmul.f32 %v1755_v59, %v1797_v56  ;;  %v602_v56 = vmul.f32 %v1889_v4, %v1818_v8 }
 0x138   :  { %866 = vperm.xlu0 %1335, %v792_v57   ;;  %v1891_v10 = vpop.permute.xlu2 %493 }
 0x139   :  { %714 = vperm.xlu2 %1336, %v640_v32   ;;  %709 = vperm.xlu1 %1337, %v639_v41   ;;  %v454_v25 = vpop.permute.xlu1 %453  ;;  %v416_v7 = vadd.f32 %v400_v27, %v319_v39 }
 0x13a   :  { %v502_v58 = vmul.f32 %v1755_v59, %v454_v25  ;;  %v52_v19 = vpop.permute.xlu0 %51  ;;  %v212_v25 = vmul.f32 %v1618_v49, %v1584_v37  ;;  %v1943_v37 = vld [vmem:[%s2271_s5 + $0x20] sm:$0xff] }
 0x13b   :  { %v126_v36 = vmul.f32 %v1612_v47, %v52_v19  ;;  %v513_v63 = vadd.f32 %v497_v33, %v416_v7 }
 0x13c   :  { %v518_v61 = vadd.f32 %v502_v58, %v1741_v14 }
 0x13d   :  { %v223_v13 = vadd.f32 %v207_v42, %v126_v36  ;;  %v1910_v31 = vadd.f32 %v594_v46, %v513_v63  ;;  %v309_v42 = vmul.f32 %v1615_v48, %v1707_v35  ;;  %v782_v36 = vld [vmem:[%s2270_s4 + $0x20] sm:$0xff]  ;;  %v503_v63 = vmul.f32 %v1755_v59, %v1835_v20 }
 0x13e   :  { %v1918_v14 = vadd.f32 %v599_v18, %v518_v61  ;;  %v605_v20 = vmul.f32 %v1889_v4, %v1838_v26 }
 0x13f   :  { %v320_v34 = vadd.f32 %v304_v52, %v223_v13 }
 0x140   :  { %1010 = vperm.xlu0 %1335, %v1908_v16  }
 0x141   :  { %801 = vperm.xlu2 %1336, %v779_v51   ;;  %796 = vperm.xlu1 %1337, %v778_v0   ;;  %v466_v57 = vpop.permute.xlu1 %465  ;;  %v539_v32 = vpop.permute.xlu2 %538  ;;  %v417_v41 = vadd.f32 %v401_v24, %v320_v34  ;;  %v215_v24 = vmul.f32 %v1618_v49, %v1592_v40  ;;  %v1976_v40 = vld [vmem:[%s2271_s5 + $0x38] sm:$0xff] }
 0x142   :  { %v505_v27 = vmul.f32 %v1755_v59, %v466_v57  ;;  %v596_v39 = vmul.f32 %v1889_v4, %v539_v32  ;;  %v77_v33 = vpop.permute.xlu0 %76  ;;  %v312_v32 = vmul.f32 %v1615_v48, %v1724_v11 }
 0x143   :  { %v131_v54 = vmul.f32 %v1612_v47, %v77_v33  ;;  %v1930_v7 = vadd.f32 %v498_v22, %v417_v41 }
 0x144   :  { %v521_v58 = vadd.f32 %v505_v27, %v1752_v6  ;;  %v1936_v19 = vadd.f32 %v596_v39, %v1778_v44  ;;  %v781_v6 = vld [vmem:[%s2270_s4 + $0x18] sm:$0xff]  ;;  %v406_v44 = vmul.f32 %v1720_v30, %v1671_v29  ;;  %v506_v39 = vmul.f32 %v1755_v59, %v1853_v5 }
 0x145   :  { %v228_v46 = vadd.f32 %v212_v25, %v131_v54  ;;  %v785_v27 = vld [vmem:[%s2270_s4 + $0x38] sm:$0xff]  ;;  %v608_v5 = vmul.f32 %v1889_v4, %v1855_v9 }
 0x146   :  { %v1951_v8 = vadd.f32 %v602_v56, %v521_v58 }
 0x147   :  { %v325_v35 = vadd.f32 %v309_v42, %v228_v46  ;;  %v218_v46 = vmul.f32 %v1618_v49, %v1599_v43  ;;  %v2009_v43 = vld [vmem:[%s2271_s5 + $0x50] sm:$0xff] }
 0x148   :  { %1025 = vperm.xlu0 %1335, %v1943_v37  }
 0x149   :  { %816 = vperm.xlu2 %1336, %v782_v36   ;;  %811 = vperm.xlu1 %1337, %v781_v6   ;;  %v478_v18 = vpop.permute.xlu1 %477  ;;  %v547_v61 = vpop.permute.xlu2 %546  ;;  %v422_v52 = vadd.f32 %v406_v44, %v325_v35  ;;  %v315_v35 = vmul.f32 %v1615_v48, %v1735_v38 }
 0x14a   :  { %v508_v13 = vmul.f32 %v1755_v59, %v478_v18  ;;  %v598_v51 = vmul.f32 %v1889_v4, %v547_v61  ;;  %v92_v0 = vpop.permute.xlu0 %91  ;;  %v788_v18 = vld [vmem:[%s2270_s4 + $0x50] sm:$0xff]  ;;  %v509_v61 = vmul.f32 %v1755_v59, %v1866_v45  ;;  %v318_v45 = vmul.f32 %v1615_v48, %v1746_v55 }
 0x14b   :  { %v134_v29 = vmul.f32 %v1612_v47, %v92_v0  ;;  %v1963_v34 = vadd.f32 %v503_v63, %v422_v52  ;;  %v512_v55 = vmul.f32 %v1755_v59, %v1891_v10  ;;  %v793_v10 = vld [vmem:[%s2270_s4 + $0x78] sm:$0xff] }
 0x14c   :  { %v524_v22 = vadd.f32 %v508_v13, %v1766_v12  ;;  %v1969_v57 = vadd.f32 %v598_v51, %v1822_v21  ;;  %v784_v12 = vld [vmem:[%s2270_s4 + $0x30] sm:$0xff]  ;;  %v409_v21 = vmul.f32 %v1720_v30, %v1688_v53 }
 0x14d   :  { %v231_v41 = vadd.f32 %v215_v24, %v134_v29  ;;  %v221_v29 = vmul.f32 %v1618_v49, %v1620_v50  ;;  %v790_v50 = vld [vmem:[%s2270_s4 + $0x60] sm:$0xff] }
 0x14e   :  { %v1984_v26 = vadd.f32 %v605_v20, %v524_v22 }
 0x14f   :  { %v328_v11 = vadd.f32 %v312_v32, %v231_v41 }
 0x150   :  { %1040 = vperm.xlu0 %1335, %v1976_v40  }
 0x151   :  { %831 = vperm.xlu2 %1336, %v785_v27   ;;  %826 = vperm.xlu1 %1337, %v784_v12   ;;  %v490_v33 = vpop.permute.xlu1 %489  ;;  %v559_v25 = vpop.permute.xlu2 %558  ;;  %v425_v54 = vadd.f32 %v409_v21, %v328_v11  ;;  %v2039_v27 = vld [vmem:[%s2271_s5 + $0x68] sm:$0xff] }
 0x152   :  { %v511_v56 = vmul.f32 %v1755_v59, %v490_v33  ;;  %v601_v58 = vmul.f32 %v1889_v4, %v559_v25  ;;  %v107_v42 = vpop.permute.xlu0 %106  ;;  %v987_v59 = vld [vmem:[%s2271_s5] sm:$0xff] }
 0x153   :  { %v137_v53 = vmul.f32 %v1612_v47, %v107_v42  ;;  %v1996_v36 = vadd.f32 %v506_v39, %v425_v54 }
 0x154   :  { %v527_v6 = vadd.f32 %v511_v56, %v1787_v1  ;;  %v2002_v44 = vadd.f32 %v601_v58, %v1807_v15  ;;  %v787_v1 = vld [vmem:[%s2270_s4 + $0x48] sm:$0xff]  ;;  %v412_v15 = vmul.f32 %v1720_v30, %v1700_v60 }
 0x155   :  { %v234_v63 = vadd.f32 %v218_v46, %v137_v53 }
 0x156   :  { %v2017_v9 = vadd.f32 %v608_v5, %v527_v6  ;;  %v2074_v5 = vld [vmem:[%s2271_s5 + $0x18] sm:$0xff]  ;;  %v2079_v6 = vld [vmem:[%s2271_s5 + $0x10] sm:$0xff] }
 0x157   :  { %v331_v38 = vadd.f32 %v315_v35, %v234_v63 }
 0x158   :  { %1055 = vperm.xlu0 %1335, %v2009_v43  }
 0x159   :  { %846 = vperm.xlu2 %1336, %v788_v18   ;;  %841 = vperm.xlu1 %1337, %v787_v1   ;;  %v571_v52 = vpop.permute.xlu2 %570  ;;  %v428_v13 = vadd.f32 %v412_v15, %v331_v38  ;;  %v2091_v15 = vld [vmem:[%s2271_s5 + $0x30] sm:$0xff]  ;;  %v995_v38 = vld [vmem:[%s2271_s5 + $0x40] sm:$0xff] }
 0x15a   :  { %v604_v51 = vmul.f32 %v1889_v4, %v571_v52  ;;  %v122_v0 = vpop.permute.xlu0 %121  ;;  %v535_v24 = vpop.permute.xlu1 %534 }
 0x15b   :  { %v140_v20 = vmul.f32 %v1612_v47, %v122_v0  ;;  %v595_v60 = vmul.f32 %v1889_v4, %v535_v24  ;;  %v2029_v22 = vadd.f32 %v509_v61, %v428_v13  ;;  %v791_v47 = vld [vmem:[%s2270_s4 + $0x68] sm:$0xff] }
 0x15c   :  { %v2032_v32 = vadd.f32 %v604_v51, %v1827_v23  ;;  %v415_v23 = vmul.f32 %v1720_v30, %v1712_v62 }
 0x15d   :  { %v237_v41 = vadd.f32 %v221_v29, %v140_v20  ;;  %v611_v49 = vadd.f32 %v595_v60, %v1930_v7  ;;  %v2103_v29 = vld [vmem:[%s2271_s5 + $0x48] sm:$0xff]  ;;  %v998_v20 = vld [vmem:[%s2271_s5 + $0x58] sm:$0xff] }
 0x15f   :  { %v334_v48 = vadd.f32 %v318_v45, %v237_v41 }
 0x160   :  { %1070 = vperm.xlu0 %1335, %v2039_v27  }
 0x161   :  { %861 = vperm.xlu2 %1336, %v791_v47   ;;  %856 = vperm.xlu1 %1337, %v790_v50   ;;  %v583_v7 = vpop.permute.xlu2 %582  ;;  %v431_v12 = vadd.f32 %v415_v23, %v334_v48  ;;  %v2113_v47 = vld [vmem:[%s2271_s5 + $0x60] sm:$0xff]  ;;  %v1001_v48 = vld [vmem:[%s2271_s5 + $0x70] sm:$0xff] }
 0x162   :  { %v607_v21 = vmul.f32 %v1889_v4, %v583_v7  ;;  %v650_v11 = vpop.permute.xlu0 %649  ;;  %v543_v39 = vpop.permute.xlu1 %542 }
 0x163   :  { %v723_v33 = vadd.f32 %v650_v11, %v611_v49  ;;  %v597_v25 = vmul.f32 %v1889_v4, %v543_v39  ;;  %v528_v54 = vadd.f32 %v512_v55, %v431_v12 }
 0x164   :  { %v2056_v62 = vadd.f32 %v607_v21, %v1845_v17 }
 0x165   :  { %v613_v30 = vadd.f32 %v597_v25, %v1873_v28  ;;  %v739_v46 = vmax.f32 %v723_v33, 0.0  ;;  %v2126_v33 = vld [vmem:[%s2271_s5 + $0x78] sm:$0xff] }
 0x168   :  { %1338 = vset.pattern.permute.xlu0 %v1369_v2 }
 0x169   :  { %1005 = vperm.xlu2 %1336, %v987_v59   ;;  %871 = vperm.xlu1 %1337, %v793_v10  }
 0x16a   :  { %v555_v56 = vpop.permute.xlu1 %554  ;;  %1121 = vperm.xlu0 %1338, %v987_v59   ;;  %v675_v63 = vpop.permute.xlu0 %674 }
 0x16b   :  { %v600_v58 = vmul.f32 %v1889_v4, %v555_v56  ;;  %v645_v17 = vpop.permute.xlu2 %644 }
 0x16c   :  { %v722_v42 = vadd.f32 %v645_v17, %v1910_v31  ;;  %v992_v31 = vld [vmem:[%s2271_s5 + $0x28] sm:$0xff] }
 0x16d   :  { %v2069_v28 = vadd.f32 %v600_v58, %v1963_v34 }
 0x16e   :  { %v738_v53 = vmax.f32 %v722_v42, 0.0 }
 0x170   :  { %v2081_v35 = vpack.c.bf16 %v739_v46, %v738_v53 }
 0x171   :  { %1020 = vperm.xlu2 %1336, %v2074_v5   ;;  %1015 = vperm.xlu1 %1337, %v2079_v6  }
 0x172   :  { %v567_v34 = vpop.permute.xlu1 %566  ;;  %1141 = vperm.xlu0 %1338, %v992_v31   ;;  %v690_v0 = vpop.permute.xlu0 %689 }
 0x173   :  { %v660_v18 = vpop.permute.xlu2 %659  ;;  %v603_v61 = vmul.f32 %v1889_v4, %v567_v34  ;;  %v728_v34 = vadd.f32 %v675_v63, %v2069_v28 }
 0x174   :  { %v725_v1 = vadd.f32 %v660_v18, %v613_v30 }
 0x175   :  { %v619_v24 = vadd.f32 %v603_v61, %v1996_v36 }
 0x176   :  { %v741_v21 = vmax.f32 %v725_v1, 0.0 }
 0x177   :  { %v731_v60 = vadd.f32 %v690_v0, %v619_v24 }
 0x179   :  { %1035 = vperm.xlu2 %1336, %v2091_v15   ;;  %1030 = vperm.xlu1 %1337, %v992_v31   ;;  %v747_v36 = vmax.f32 %v731_v60, 0.0 }
 0x17a   :  { %v579_v52 = vpop.permute.xlu1 %578  ;;  %1153 = vperm.xlu0 %1338, %v995_v38   ;;  %v705_v50 = vpop.permute.xlu0 %704 }
 0x17b   :  { %v670_v13 = vpop.permute.xlu2 %669  ;;  %v606_v61 = vmul.f32 %v1889_v4, %v579_v52 }
 0x17c   :  { %v727_v51 = vadd.f32 %v670_v13, %v1918_v14 }
 0x17e   :  { %v743_v58 = vmax.f32 %v727_v51, 0.0 }
 0x181   :  { %1050 = vperm.xlu2 %1336, %v2103_v29   ;;  %1045 = vperm.xlu1 %1337, %v995_v38  }
 0x182   :  { %v591_v45 = vpop.permute.xlu1 %590  ;;  %1165 = vperm.xlu0 %1338, %v998_v20   ;;  %v720_v30 = vpop.permute.xlu0 %719 }
 0x183   :  { %v685_v41 = vpop.permute.xlu2 %684  ;;  %v609_v55 = vmul.f32 %v1889_v4, %v591_v45 }
 0x184   :  { %v730_v14 = vadd.f32 %v685_v41, %v1951_v8 }
 0x185   :  { %v625_v11 = vadd.f32 %v609_v55, %v528_v54 }
 0x186   :  { %v746_v49 = vmax.f32 %v730_v14, 0.0 }
 0x187   :  { %v737_v59 = vadd.f32 %v720_v30, %v625_v11 }
 0x188   :  { %v2115_v23 = vpack.c.bf16 %v747_v36, %v746_v49 }
 0x189   :  { %1065 = vperm.xlu2 %1336, %v2113_v47   ;;  %1060 = vperm.xlu1 %1337, %v998_v20   ;;  %v753_v42 = vmax.f32 %v737_v59, 0.0 }
 0x18a   :  { %1177 = vperm.xlu0 %1338, %v1001_v48   ;;  %v807_v60 = vpop.permute.xlu0 %806 }
 0x18b   :  { %v700_v8 = vpop.permute.xlu2 %699  ;;  %v655_v7 = vpop.permute.xlu1 %654 }
 0x18c   :  { %v724_v12 = vadd.f32 %v655_v7, %v1936_v19 }
 0x18e   :  { %v740_v39 = vmax.f32 %v724_v12, 0.0 }
 0x190   :  { %v2128_v25 = vpack.c.bf16 %v741_v21, %v740_v39 }
 0x191   :  { %1080 = vperm.xlu2 %1336, %v2126_v33   ;;  %1075 = vperm.xlu1 %1337, %v1001_v48  }
 0x192   :  { %1342 = vset.pattern.permute.xlu0 %v1370_v3  ;;  %v822_v14 = vpop.permute.xlu0 %821 }
 0x193   :  { %v715_v10 = vpop.permute.xlu2 %714  ;;  %v665_v56 = vpop.permute.xlu1 %664 }
 0x194   :  { %v736_v19 = vadd.f32 %v715_v10, %v2017_v9  ;;  %v726_v54 = vadd.f32 %v665_v56, %v1969_v57  ;;  %v744_v57 = vmax.f32 %v728_v34, 0.0 }
 0x196   :  { %v752_v17 = vmax.f32 %v736_v19, 0.0  ;;  %v742_v46 = vmax.f32 %v726_v54, 0.0 }
 0x198   :  { %v777_v53 = vpack.c.bf16 %v753_v42, %v752_v17  ;;  %v772_v31 = vpack.c.bf16 %v743_v58, %v742_v46 }
 0x199   :  { %1339 = vset.pattern.permute.xlu1 %v1369_v2  ;;  %1340 = vset.pattern.permute.xlu2 %v1369_v2  ;;  %v733_v2 = vadd.f32 %v700_v8, %v1984_v26 }
 0x19a   :  { %922 = vmatpush.bf16.msra.mxu0 %v777_v53  ;;  %1287 = vmatpush.bf16.msra.mxu1 %v777_v53 }
 0x19b   :  { %1288 = vmatpush.bf16.msra.mxu2 %v777_v53  ;;  %1289 = vmatpush.bf16.msra.mxu3 %v777_v53  ;;  %v680_v18 = vpop.permute.xlu1 %679  ;;  %v749_v63 = vmax.f32 %v733_v2, 0.0 }
 0x19c   :  { %v729_v9 = vadd.f32 %v680_v18, %v2002_v44  ;;  %1125 = vperm.xlu1 %1339, %v1908_v16   ;;  %1129 = vperm.xlu2 %1340, %v2079_v6   ;;  %v622_v44 = vadd.f32 %v606_v61, %v2029_v22  ;;  %v1280_v22 = vld [vmem:[%s2269_s3 + $0x8] sm:$0xff] }
 0x19e   :  { %v745_v1 = vmax.f32 %v729_v9, 0.0  ;;  %v734_v6 = vadd.f32 %v705_v50, %v622_v44 }
 0x1a0   :  { %v773_v38 = vpack.c.bf16 %v745_v1, %v744_v57  ;;  %v750_v4 = vmax.f32 %v734_v6, 0.0 }
 0x1a3   :  { %v695_v13 = vpop.permute.xlu1 %694 }
 0x1a4   :  { %v732_v28 = vadd.f32 %v695_v13, %v2032_v32  ;;  %1133 = vperm.xlu1 %1339, %v2074_v5   ;;  %1137 = vperm.xlu2 %1340, %v1943_v37   ;;  %v1279_v37 = vld [vmem:[%s2269_s3] sm:$0xff]  ;;  %v1286_v5 = vld [vmem:[%s2269_s3 + $0x38] sm:$0xff] }
 0x1a6   :  { %v748_v16 = vmax.f32 %v732_v28, 0.0 }
 0x1a8   :  { %v775_v51 = vpack.c.bf16 %v749_v63, %v748_v16 }
 0x1ab   :  { %v710_v0 = vpop.permute.xlu1 %709 }
 0x1ac   :  { %v735_v24 = vadd.f32 %v710_v0, %v2056_v62  ;;  %1145 = vperm.xlu1 %1339, %v2091_v15   ;;  %1149 = vperm.xlu2 %1340, %v1976_v40   ;;  %v1281_v40 = vld [vmem:[%s2269_s3 + $0x10] sm:$0xff]  ;;  %v1284_v62 = vld [vmem:[%s2269_s3 + $0x28] sm:$0xff]  ;;  %v802_v15 = vpop.permute.xlu2 %801 }
 0x1ae   :  { %v751_v26 = vmax.f32 %v735_v24, 0.0 }
 0x1b0   :  { %v776_v32 = vpack.c.bf16 %v751_v26, %v750_v4 }
 0x1b2   :  { %923 = vmatpush.bf16.msra.mxu0 %v776_v32  ;;  %1290 = vmatpush.bf16.msra.mxu1 %v776_v32 }
 0x1b3   :  { %1291 = vmatpush.bf16.msra.mxu2 %v776_v32  ;;  %1292 = vmatpush.bf16.msra.mxu3 %v776_v32 }
 0x1b4   :  { %1157 = vperm.xlu1 %1339, %v2103_v29   ;;  %1161 = vperm.xlu2 %1340, %v2009_v43   ;;  %v1285_v43 = vld [vmem:[%s2269_s3 + $0x30] sm:$0xff]  ;;  %v1223_v29 = vld [vmem:[%s2272_s6] sm:$0x3]  ;;  %v817_v20 = vpop.permute.xlu2 %816 }
 0x1b6   :  { %924 = vmatpush.bf16.msra.mxu0 %v775_v51  ;;  %1293 = vmatpush.bf16.msra.mxu1 %v775_v51 }
 0x1b7   :  { %1294 = vmatpush.bf16.msra.mxu2 %v775_v51  ;;  %1295 = vmatpush.bf16.msra.mxu3 %v775_v51 }
 0x1ba   :  { %925 = vmatpush.bf16.msra.mxu0 %v2115_v23  ;;  %1296 = vmatpush.bf16.msra.mxu1 %v2115_v23 }
 0x1bb   :  { %1297 = vmatpush.bf16.msra.mxu2 %v2115_v23  ;;  %1298 = vmatpush.bf16.msra.mxu3 %v2115_v23 }
 0x1bc   :  { %1169 = vperm.xlu1 %1339, %v2113_v47   ;;  %1173 = vperm.xlu2 %1340, %v2039_v27   ;;  %v1282_v27 = vld [vmem:[%s2269_s3 + $0x18] sm:$0xff]  ;;  %v2196_v41 = vpop.permute.xlu2 %831  ;;  %v2202_v47 = vpop.permute.xlu0 %836 }
 0x1be   :  { %926 = vmatpush.bf16.msra.mxu0 %v773_v38  ;;  %1299 = vmatpush.bf16.msra.mxu1 %v773_v38 }
 0x1bf   :  { %1300 = vmatpush.bf16.msra.mxu2 %v773_v38  ;;  %1301 = vmatpush.bf16.msra.mxu3 %v773_v38 }
 0x1c2   :  { %927 = vmatpush.bf16.msra.mxu0 %v772_v31  ;;  %1302 = vmatpush.bf16.msra.mxu1 %v772_v31 }
 0x1c3   :  { %1303 = vmatpush.bf16.msra.mxu2 %v772_v31  ;;  %1304 = vmatpush.bf16.msra.mxu3 %v772_v31 }
 0x1c4   :  { %1181 = vperm.xlu1 %1339, %v2126_v33   ;;  %1341 = vset.pattern.permute.xlu2 %v1370_v3  ;;  %v1283_v3 = vld [vmem:[%s2269_s3 + $0x20] sm:$0xff]  ;;  %v2200_v36 = vpop.permute.xlu2 %846  ;;  %v2208_v48 = vpop.permute.xlu0 %851  ;;  %s1375_s3 = smov [#allocation2]  }
 0x1c5   :  { %1226 = vperm.xlu2 %1341, %v1223_v29   ;;  %s1236_s6 = sshll.u32 %s1375_s3, 4  ;;  %s1237_s6 = int_to_ptr.vmem [resolvable:$true] %s1236_s6 }
 0x1c6   :  { %928 = vmatpush.bf16.msra.mxu0 %v2128_v25  ;;  %1305 = vmatpush.bf16.msra.mxu1 %v2128_v25 }
 0x1c7   :  { %1306 = vmatpush.bf16.msra.mxu2 %v2128_v25  ;;  %1307 = vmatpush.bf16.msra.mxu3 %v2128_v25 }
 0x1ca   :  { %929 = vmatpush.bf16.msra.mxu0 %v2081_v35  ;;  %1308 = vmatpush.bf16.msra.mxu1 %v2081_v35 }
 0x1cb   :  { %1309 = vmatpush.bf16.msra.mxu2 %v2081_v35  ;;  %1310 = vmatpush.bf16.msra.mxu3 %v2081_v35  ;;  %v797_v35 = vpop.permute.xlu1 %796 }
 0x1cc   :  { %v2206_v23 = vpop.permute.xlu2 %861  ;;  %v2212_v7 = vpop.permute.xlu0 %866 }
 0x1cd   :  { %930 = vmatmul.bf16.vlgmr.msra.gmra.mxu0 %v1279_v37  ;;  %940 = vmatmul.bf16.vlgmr.msra.gmra.mxu1 %v1281_v40 }
 0x1ce   :  { %950 = vmatmul.bf16.vlgmr.msra.gmra.mxu2 %v1283_v3  ;;  %960 = vmatmul.bf16.vlgmr.msra.gmra.mxu3 %v1285_v43 }
 0x1d3   :  { %v2191_v52 = vpop.permute.xlu1 %811 }
 0x1d4   :  { %v1006_v8 = vpop.permute.xlu2 %1005  ;;  %v1011_v11 = vpop.permute.xlu0 %1010 }
 0x1db   :  { %v827_v45 = vpop.permute.xlu1 %826 }
 0x1dc   :  { %v1021_v21 = vpop.permute.xlu2 %1020  ;;  %v1026_v25 = vpop.permute.xlu0 %1025 }
 0x1dd   :  { %935 = vmatmul.bf16.gmra.mxu0 %v1280_v22  ;;  %945 = vmatmul.bf16.gmra.mxu1 %v1282_v27 }
 0x1de   :  { %955 = vmatmul.bf16.gmra.mxu2 %v1284_v62  ;;  %965 = vmatmul.bf16.gmra.mxu3 %v1286_v5 }
 0x1e3   :  { %v2198_v49 = vpop.permute.xlu1 %841 }
 0x1e4   :  { %v2216_v33 = vpop.permute.xlu2 %1035  ;;  %v2222_v10 = vpop.permute.xlu0 %1040 }
 0x1eb   :  { %v2204_v50 = vpop.permute.xlu1 %856 }
 0x1ec   :  { %v2220_v59 = vpop.permute.xlu2 %1050  ;;  %v2228_v54 = vpop.permute.xlu0 %1055 }
 0x1f3   :  { %v2210_v55 = vpop.permute.xlu1 %871 }
 0x1f4   :  { %v2226_v19 = vpop.permute.xlu2 %1065  ;;  %v2234_v53 = vpop.permute.xlu0 %1070 }
 0x1fb   :  { %v1016_v12 = vpop.permute.xlu1 %1015 }
 0x1fc   :  { %v2232_v17 = vpop.permute.xlu2 %1080  ;;  %v1122_v1 = vpop.permute.xlu0 %1121 }
 0x1fd   :  { %2274 = vst [vmem:[#allocation5_spill] sm:$0xff] %v2232_v17 }
 0x203   :  { %v2214_v39 = vpop.permute.xlu1 %1030 }
 0x204   :  { %v1130_v34 = vpop.permute.xlu2 %1129  ;;  %v1142_v0 = vpop.permute.xlu0 %1141 }
 0x20b   :  { %v2218_v30 = vpop.permute.xlu1 %1045 }
 0x20c   :  { %v1138_v51 = vpop.permute.xlu2 %1137 }
 0x213   :  { %v2224_v56 = vpop.permute.xlu1 %1060 }
 0x21b   :  { %v2230_v58 = vpop.permute.xlu1 %1075 }
 0x223   :  { %v1126_v31 = vpop.permute.xlu1 %1125 }
 0x22b   :  { %v1134_v61 = vpop.permute.xlu1 %1133 }
 0x233   :  { %v1146_v32 = vpop.permute.xlu1 %1145 }
 0x24a   :  { %v931_v42 = vpop.f32.mrf.mxu0  ;;  %v941_v46 = vpop.f32.mrf.mxu1 }
 0x24b   :  { %v932_v28 = vadd.f32 %v931_v42, %v797_v35  ;;  %v942_v37 = vadd.f32 %v941_v46, %v817_v20 }
 0x24d   :  { %v971_v24 = vmax.f32 %v932_v28, 0.0 }
 0x24f   :  { %v1083_v43 = vmul.f32 %v1006_v8, %v971_v24  ;;  %v1184_v5 = vmul.f32 %v1122_v1, %v971_v24 }
 0x251   :  { %v951_v18 = vpop.f32.mrf.mxu2  ;;  %v2236_v38 = vpop.f32.mrf.mxu3 }
 0x252   :  { %v933_v9 = vpop.f32.mrf.mxu0  ;;  %v943_v57 = vpop.f32.mrf.mxu1 }
 0x253   :  { %v934_v2 = vadd.f32 %v933_v9, %v802_v15  ;;  %v944_v22 = vadd.f32 %v943_v57, %v822_v14  ;;  %v975_v9 = vmax.f32 %v942_v37, 0.0 }
 0x255   :  { %v972_v6 = vmax.f32 %v934_v2, 0.0  ;;  %v976_v17 = vmax.f32 %v944_v22, 0.0  ;;  %v1087_v57 = vmul.f32 %v1026_v25, %v975_v9 }
 0x257   :  { %v1084_v40 = vmul.f32 %v1011_v11, %v972_v6  ;;  %v1185_v3 = vmul.f32 %v1126_v31, %v972_v6  ;;  %v1154_v31 = vpop.permute.xlu0 %1153  ;;  %v1158_v6 = vpop.permute.xlu1 %1157  ;;  %v1088_v37 = vmul.f32 %v2214_v39, %v976_v17 }
 0x259   :  { %v953_v13 = vpop.f32.mrf.mxu2  ;;  %v2238_v4 = vpop.f32.mrf.mxu3  ;;  %v1099_v2 = vadd.f32 %v1084_v40, %v1083_v43  ;;  %v1200_v28 = vadd.f32 %v1185_v3, %v1184_v5 }
 0x25a   :  { %v936_v44 = vpop.f32.mrf.mxu0  ;;  %v946_v63 = vpop.f32.mrf.mxu1  ;;  %v954_v24 = vadd.f32 %v953_v13, %v2198_v49 }
 0x25b   :  { %v937_v16 = vadd.f32 %v936_v44, %v807_v60  ;;  %v947_v42 = vadd.f32 %v946_v63, %v827_v45 }
 0x25c   :  { %v980_v22 = vmax.f32 %v954_v24, 0.0 }
 0x25d   :  { %v973_v26 = vmax.f32 %v937_v16, 0.0  ;;  %v1150_v16 = vpop.permute.xlu2 %1149 }
 0x25f   :  { %v1085_v35 = vmul.f32 %v1016_v12, %v973_v26  ;;  %v1186_v15 = vmul.f32 %v1130_v34, %v973_v26  ;;  %v952_v12 = vadd.f32 %v951_v18, %v2202_v47  ;;  %v977_v34 = vmax.f32 %v947_v42, 0.0 }
 0x261   :  { %v956_v27 = vpop.f32.mrf.mxu2  ;;  %v1100_v11 = vadd.f32 %v1099_v2, %v1085_v35  ;;  %v1201_v8 = vadd.f32 %v1200_v28, %v1186_v15  ;;  %v966_v1 = vpop.f32.mrf.mxu3  ;;  %v1190_v47 = vmul.f32 %v1146_v32, %v977_v34 }
 0x262   :  { %v938_v62 = vpop.f32.mrf.mxu0  ;;  %v948_v60 = vpop.f32.mrf.mxu1  ;;  %v957_v25 = vadd.f32 %v956_v27, %v2200_v36 }
 0x263   :  { %v939_v29 = vadd.f32 %v938_v62, %v2191_v52  ;;  %v949_v20 = vadd.f32 %v948_v60, %v2196_v41  ;;  %v1188_v52 = vmul.f32 %v1138_v51, %v975_v9  ;;  %v1189_v41 = vmul.f32 %v1142_v0, %v976_v17  ;;  %v1166_v27 = vpop.permute.xlu0 %1165 }
 0x264   :  { %v962_v0 = vadd.f32 %v2236_v38, %v2204_v50  ;;  %v981_v32 = vmax.f32 %v957_v25, 0.0  ;;  %v1193_v60 = vmul.f32 %v1158_v6, %v980_v22  ;;  %v967_v50 = vadd.f32 %v966_v1, %v2212_v7 }
 0x265   :  { %v974_v44 = vmax.f32 %v939_v29, 0.0  ;;  %v978_v26 = vmax.f32 %v949_v20, 0.0  ;;  %v1092_v29 = vmul.f32 %v2220_v59, %v980_v22 }
 0x266   :  { %v983_v28 = vmax.f32 %v962_v0, 0.0  ;;  %v1093_v38 = vmul.f32 %v2228_v54, %v981_v32 }
 0x267   :  { %v1086_v14 = vmul.f32 %v1021_v21, %v974_v44  ;;  %v1187_v46 = vmul.f32 %v1134_v61, %v974_v44  ;;  %v979_v21 = vmax.f32 %v952_v12, 0.0  ;;  %v1089_v61 = vmul.f32 %v2216_v33, %v977_v34  ;;  %v1162_v33 = vpop.permute.xlu2 %1161 }
 0x268   :  { %v1090_v62 = vmul.f32 %v2222_v10, %v978_v26  ;;  %v1191_v49 = vmul.f32 %v1150_v16, %v978_v26  ;;  %v964_v10 = vadd.f32 %v2238_v4, %v2206_v23  ;;  %v1194_v44 = vmul.f32 %v1162_v33, %v981_v32 }
 0x269   :  { %v1101_v45 = vadd.f32 %v1100_v11, %v1086_v14  ;;  %v1202_v63 = vadd.f32 %v1201_v8, %v1187_v46  ;;  %v958_v43 = vpop.f32.mrf.mxu2  ;;  %v1091_v17 = vmul.f32 %v2218_v30, %v979_v21  ;;  %v1192_v35 = vmul.f32 %v1154_v31, %v979_v21  ;;  %v968_v2 = vpop.f32.mrf.mxu3 }
 0x26a   :  { %v959_v39 = vadd.f32 %v958_v43, %v2208_v48  ;;  %v1170_v30 = vpop.permute.xlu1 %1169  ;;  %v984_v11 = vmax.f32 %v964_v10, 0.0  ;;  %v969_v59 = vadd.f32 %v968_v2, %v2210_v55  ;;  %v1095_v46 = vmul.f32 %v2226_v19, %v983_v28 }
 0x26b   :  { %v1102_v40 = vadd.f32 %v1101_v45, %v1087_v57  ;;  %v1203_v3 = vadd.f32 %v1202_v63, %v1188_v52  ;;  %v1196_v31 = vmul.f32 %v1170_v30, %v983_v28  ;;  %v985_v12 = vmax.f32 %v967_v50, 0.0  ;;  %v1178_v6 = vpop.permute.xlu0 %1177 }
 0x26c   :  { %v982_v48 = vmax.f32 %v959_v39, 0.0  ;;  %v1096_v7 = vmul.f32 %v2234_v53, %v984_v11  ;;  %v986_v63 = vmax.f32 %v969_v59, 0.0 }
 0x26d   :  { %v1103_v18 = vadd.f32 %v1102_v40, %v1088_v37  ;;  %v1204_v51 = vadd.f32 %v1203_v3, %v1189_v41  ;;  %v1097_v55 = vmul.f32 %v2230_v58, %v985_v12  ;;  %v2275_v41 = vld [vmem:[#allocation5_spill] sm:$0xff] }
 0x26e   :  { %v1094_v8 = vmul.f32 %v2224_v56, %v982_v48  ;;  %v1195_v4 = vmul.f32 %v1166_v27, %v982_v48  ;;  %v1198_v56 = vmul.f32 %v1178_v6, %v985_v12  ;;  %v1098_v19 = vmul.f32 %v2275_v41, %v986_v63 }
 0x26f   :  { %v1104_v5 = vadd.f32 %v1103_v18, %v1089_v61  ;;  %v1205_v13 = vadd.f32 %v1204_v51, %v1190_v47  ;;  %v1174_v54 = vpop.permute.xlu2 %1173 }
 0x270   :  { %v1197_v52 = vmul.f32 %v1174_v54, %v984_v11 }
 0x271   :  { %v1105_v15 = vadd.f32 %v1104_v5, %v1090_v62  ;;  %v1206_v36 = vadd.f32 %v1205_v13, %v1191_v49 }
 0x272   :  { %v1182_v37 = vpop.permute.xlu1 %1181 }
 0x273   :  { %v1106_v42 = vadd.f32 %v1105_v15, %v1091_v17  ;;  %v1207_v9 = vadd.f32 %v1206_v36, %v1192_v35  ;;  %v1199_v3 = vmul.f32 %v1182_v37, %v986_v63 }
 0x275   :  { %v1107_v16 = vadd.f32 %v1106_v42, %v1092_v29  ;;  %v1208_v20 = vadd.f32 %v1207_v9, %v1193_v60 }
 0x277   :  { %v1108_v23 = vadd.f32 %v1107_v16, %v1093_v38  ;;  %v1209_v14 = vadd.f32 %v1208_v20, %v1194_v44  ;;  %v1227_v13 = vpop.permute.xlu2 %1226 }
 0x279   :  { %v1109_v34 = vadd.f32 %v1108_v23, %v1094_v8  ;;  %v1210_v57 = vadd.f32 %v1209_v14, %v1195_v4 }
 0x27b   :  { %v1110_v1 = vadd.f32 %v1109_v34, %v1095_v46  ;;  %v1211_v45 = vadd.f32 %v1210_v57, %v1196_v31 }
 0x27d   :  { %v1111_v24 = vadd.f32 %v1110_v1, %v1096_v7  ;;  %v1212_v26 = vadd.f32 %v1211_v45, %v1197_v52 }
 0x27f   :  { %v1112_v40 = vadd.f32 %v1111_v24, %v1097_v55  ;;  %v1213_v21 = vadd.f32 %v1212_v26, %v1198_v56 }
 0x281   :  { %v1113_v61 = vadd.f32 %v1112_v40, %v1098_v19  ;;  %v1214_v43 = vadd.f32 %v1213_v21, %v1199_v3 }
 0x283   :  { %v1114_v53 = vrot.slane %v1113_v61, 4  ;;  %v1215_v47 = vrot.slane %v1214_v43, 4 }
 0x285   :  { %v1115_v25 = vadd.f32 %v1114_v53, %v1113_v61  ;;  %v1216_v18 = vadd.f32 %v1215_v47, %v1214_v43 }
 0x287   :  { %v1116_v51 = vrot.slane %v1115_v25, 2  ;;  %v1217_v22 = vrot.slane %v1216_v18, 2 }
 0x289   :  { %v1117_v62 = vadd.f32 %v1116_v51, %v1115_v25  ;;  %v1218_v5 = vadd.f32 %v1217_v22, %v1216_v18 }
 0x28b   :  { %v1118_v58 = vrot.slane %v1117_v62, 1  ;;  %v1219_v49 = vrot.slane %v1218_v5, 1 }
 0x28d   :  { %v1119_v39 = vadd.f32 %v1118_v58, %v1117_v62  ;;  %v1220_v17 = vadd.f32 %v1219_v49, %v1218_v5 }
 0x28f   :  { %v1222_v0 = vsel %vm1221_vm0, %v1119_v39, %v1220_v17 }
 0x290   :  { %v1229_v33 = vadd.f32 %v1227_v13, %v1222_v0 }
 0x292   :  { %1230 = vst [vmem:[#allocation2] sm:$0x3] %v1229_v33 }
 0x293   :  { %1241 = dma.vmem_to_hbm [thread:$0]  %s1237_s6, 32, %s1239_s20, [#allocation3]  }
 0x294   :  { %1367 = dma.done.wait [#allocation3], 32  }
 0x295   :  { %1368 = vsyncadd [#allocation3], 4294967264 }
 0x296   :  { %1246 = vsyncpa [#allocation3], 1 }

</bundles_post_ra>
